<compile_context>
chip_gen: v7x
topology: tpu7x:2x2x1
jax: 0.10.0
libtpu: 0.0.40
codegen_flags: <defaults>
</compile_context>

<pallas_src>
import jax
import jax.numpy as jnp
from jax.experimental import pallas as pl
from jax.experimental.pallas import tpu as pltpu

LN_EPS = 1e-5  # torch.nn.LayerNorm default eps


def _layernorm(r_f32, gamma, beta, out_dtype):
    """LayerNorm over the last axis, all math in f32."""
    mean = jnp.mean(r_f32, axis=-1, keepdims=True)
    c = r_f32 - mean                                   # reused centred temp
    var = jnp.mean(c * c, axis=-1, keepdims=True)
    inv = jax.lax.rsqrt(var + LN_EPS)                  # EUP, effectively free
    return (c * inv * gamma + beta).astype(out_dtype)


def _kernel_single(x_ref, w_ref, b_ref, g_ref, bb_ref, o_ref):
    """Full-K path: one (tm, D) output tile per grid step, no scratch."""
    x = x_ref[...]
    r = (jnp.dot(x, w_ref[...], preferred_element_type=jnp.float32)
         + b_ref[...] + x.astype(jnp.float32))
    o_ref[...] = _layernorm(r, g_ref[...], bb_ref[...], o_ref.dtype)


def _make_kernel_ktiled(num_k, tile_k):
    """K-tiled path: grid = (row_tiles, num_k), resident f32 accumulator."""

    def kernel(x_ref, w_ref, b_ref, g_ref, bb_ref, o_ref, acc_ref):
        k = pl.program_id(1)

        @pl.when(k == 0)
        def _init():
            acc_ref[...] = jnp.zeros_like(acc_ref)

        # MXU partial matmul, f32 accumulation.
        acc_ref[...] += jnp.dot(x_ref[...], w_ref[...],
                                preferred_element_type=jnp.float32)

        # Fold this K-tile's residual slice into the matching output columns
        # (x columns for K-tile k == output columns [k*tile_k, (k+1)*tile_k)).
        col = pl.multiple_of(k * tile_k, tile_k)       # lane-aligned start
        acc_ref[:, pl.ds(col, tile_k)] += x_ref[...].astype(jnp.float32)

        @pl.when(k == num_k - 1)
        def _epilogue():
            r = acc_ref[...] + b_ref[...]
            o_ref[...] = _layernorm(r, g_ref[...], bb_ref[...], o_ref.dtype)

    return kernel


def residual_forward(x, w, b, gamma, beta, *, tile_rows=256, tile_k=None,
                     compute_dtype=None):
    """x: (B, S, D); w: (D, D); b, gamma, beta: (1, D).

    compute_dtype: optional dtype for the x/w DMA + MXU (e.g. jnp.bfloat16).
    LayerNorm / accumulation always in f32; output keeps x.dtype.
    """
    B, S, D = x.shape
    rows = B * S
    out_dtype = jnp.dtype(x.dtype)
    cdt = jnp.dtype(compute_dtype) if compute_dtype is not None else out_dtype
    csize = cdt.itemsize

    # ---- row tiling: big tiles feed the MXU; respect sublane packing ----
    pack = 16 if csize == 2 else 8
    tm = max(pack, min(tile_rows, rows))
    tm = ((tm + pack - 1) // pack) * pack
    rows_p = ((rows + tm - 1) // tm) * tm
    row_tiles = rows_p // tm

    # ---- K tiling: keep the double-buffered weight tile VMEM-friendly ----
    if tile_k is None:
        tile_k = D
        if 2 * D * D * csize > (16 << 20):
            for cand in (1024, 512, 256, 128):
                if D % cand == 0:
                    tile_k = cand
                    break
    assert D % tile_k == 0, "tile_k must divide D"
    num_k = D // tile_k
    if num_k > 1:
        assert tile_k % 128 == 0, "K tiles must be lane-aligned (multiple of 128)"

    # ---- wrapper-side layout / dtype plumbing ----
    xf = x.reshape(rows, D)
    if rows_p != rows:
        xf = jnp.pad(xf, ((0, rows_p - rows), (0, 0)))
    xc = xf.astype(cdt)
    wc = w.astype(cdt)
    bf = b.reshape(1, D).astype(jnp.float32)
    gf = gamma.reshape(1, D).astype(jnp.float32)
    btf = beta.reshape(1, D).astype(jnp.float32)

    if num_k == 1:
        kernel = _kernel_single
        grid = (row_tiles,)
        in_specs = [
            pl.BlockSpec((tm, D), lambda i: (i, 0)),        # x
            pl.BlockSpec((D, D), lambda i: (0, 0)),         # weight (resident)
            pl.BlockSpec((1, D), lambda i: (0, 0)),         # bias
            pl.BlockSpec((1, D), lambda i: (0, 0)),         # LN gamma
            pl.BlockSpec((1, D), lambda i: (0, 0)),         # LN beta
        ]
        out_specs = pl.BlockSpec((tm, D), lambda i: (i, 0))
        scratch_shapes = []
        dim_sem = ("parallel",)
        est = (2 * tm * D * csize + 2 * D * D * csize
               + 2 * tm * D * out_dtype.itemsize + 6 * D * 4)
        weight_bytes = D * D * csize                         # fetched once
    else:
        kernel = _make_kernel_ktiled(num_k, tile_k)
        grid = (row_tiles, num_k)
        in_specs = [
            pl.BlockSpec((tm, tile_k), lambda i, k: (i, k)),  # x K-tile
            pl.BlockSpec((tile_k, D), lambda i, k: (k, 0)),   # weight K-tile
            pl.BlockSpec((1, D), lambda i, k: (0, 0)),        # bias
            pl.BlockSpec((1, D), lambda i, k: (0, 0)),        # LN gamma
            pl.BlockSpec((1, D), lambda i, k: (0, 0)),        # LN beta
        ]
        out_specs = pl.BlockSpec((tm, D), lambda i, k: (i, 0))
        scratch_shapes = [pltpu.VMEM((tm, D), jnp.float32)]
        dim_sem = ("parallel", "arbitrary")
        est = (2 * tm * tile_k * csize + 2 * tile_k * D * csize
               + 2 * tm * D * out_dtype.itemsize + tm * D * 4 + 6 * D * 4)
        weight_bytes = row_tiles * D * D * csize             # re-read per row tile

    # ---- raise the scoped VMEM limit only when the tile budget needs it ----
    vmem_limit = None
    if est > (28 << 20):
        vmem_limit = min(int(est * 1.25) + (2 << 20), 64 << 20)  # v7x-safe cap

    compiler_params = pltpu.CompilerParams(
        dimension_semantics=dim_sem,
        vmem_limit_bytes=vmem_limit,
    )

    cost = pl.CostEstimate(
        flops=2 * rows_p * D * D,
        transcendentals=rows_p,                              # one rsqrt per row
        bytes_accessed=(rows_p * D * csize                   # x read once
                        + weight_bytes
                        + rows_p * D * out_dtype.itemsize),  # output write
    )

    out = pl.pallas_call(
        kernel,
        out_shape=jax.ShapeDtypeStruct((rows_p, D), out_dtype),
        grid_spec=pltpu.PrefetchScalarGridSpec(
            num_scalar_prefetch=0,
            grid=grid,
            in_specs=in_specs,
            out_specs=out_specs,
            scratch_shapes=scratch_shapes,
        ),
        compiler_params=compiler_params,
        cost_estimate=cost,
    )(xc, wc, bf, gf, btf)

    return out[:rows].reshape(B, S, D)


def reference_forward(x, w, b, gamma, beta):
    y = jnp.einsum("bsd,de->bse", x, w) + b.reshape(-1)
    r = x + y
    mean = jnp.mean(r, axis=-1, keepdims=True)
    var = jnp.mean((r - mean) ** 2, axis=-1, keepdims=True)
    return ((r - mean) * jax.lax.rsqrt(var + LN_EPS) * gamma.reshape(-1)
            + beta.reshape(-1))


if __name__ == "__main__":
    key = jax.random.PRNGKey(0)

    # ---- test 1: small D (full-K fast path), f32 and bf16 compute ----
    B, S, D = 2, 8, 32
    kx, kw, kb = jax.random.split(key, 3)
    x = jax.random.normal(kx, (B, S, D), dtype=jnp.float32)
    w = jax.random.normal(kw, (D, D), dtype=jnp.float32) * (1.0 / D ** 0.5)
    b = jax.random.normal(kb, (1, D), dtype=jnp.float32) * 0.01
    gamma = jnp.ones((1, D), dtype=jnp.float32)
    beta = jnp.zeros((1, D), dtype=jnp.float32)

    ref = reference_forward(x, w, b, gamma, beta)

    out = jax.block_until_ready(residual_forward(x, w, b, gamma, beta))
    assert out.shape == (B, S, D)
    assert jnp.allclose(out, ref, atol=1e-4, rtol=1e-4)

    out_bf16 = jax.block_until_ready(
        residual_forward(x, w, b, gamma, beta, compute_dtype=jnp.bfloat16))
    assert out_bf16.shape == (B, S, D)
    assert jnp.allclose(out_bf16, ref, atol=5e-2, rtol=5e-2)

    # ---- test 2: exercise the K-tiled accumulator path (tile_k < D) ----
    B2, S2, D2 = 2, 8, 256
    kx2, kw2, kb2 = jax.random.split(jax.random.PRNGKey(1), 3)
    x2 = jax.random.normal(kx2, (B2, S2, D2), dtype=jnp.float32)
    w2 = jax.random.normal(kw2, (D2, D2), dtype=jnp.float32) * (1.0 / D2 ** 0.5)
    b2 = jax.random.normal(kb2, (1, D2), dtype=jnp.float32) * 0.01
    g2 = jnp.ones((1, D2), dtype=jnp.float32)
    bt2 = jnp.zeros((1, D2), dtype=jnp.float32)

    ref2 = reference_forward(x2, w2, b2, g2, bt2)
    out2 = jax.block_until_ready(
        residual_forward(x2, w2, b2, g2, bt2, tile_k=128))
    assert out2.shape == (B2, S2, D2)
    assert jnp.allclose(out2, ref2, atol=1e-3, rtol=1e-3)

    print("KERNEL_OK")
</pallas_src>

<mosaic_0001>
module attributes {stable_mosaic.version = 11 : i64} {
  func.func @_kernel_single(%arg0: i32, %arg1: memref<16x32xf32, #tpu.memory_space<vmem>>, %arg2: memref<32x32xf32, #tpu.memory_space<vmem>>, %arg3: memref<1x32xf32, #tpu.memory_space<vmem>>, %arg4: memref<1x32xf32, #tpu.memory_space<vmem>>, %arg5: memref<1x32xf32, #tpu.memory_space<vmem>>, %arg6: memref<16x32xf32, #tpu.memory_space<vmem>>) attributes {dimension_semantics = [#tpu.dimension_semantics<parallel>], iteration_bounds = array<i64: 1>, scalar_prefetch = 0 : i64, scratch_operands = 0 : i64, tpu.core_type = #tpu.core_type<tc>, window_params = [{transform_indices = @transform_0, window_bounds = array<i64: 16, 32>}, {pipeline_mode = #tpu.pipeline_mode<synchronous>, transform_indices = @transform_1, window_bounds = array<i64: 32, 32>}, {pipeline_mode = #tpu.pipeline_mode<synchronous>, transform_indices = @transform_2, window_bounds = array<i64: 1, 32>}, {pipeline_mode = #tpu.pipeline_mode<synchronous>, transform_indices = @transform_3, window_bounds = array<i64: 1, 32>}, {pipeline_mode = #tpu.pipeline_mode<synchronous>, transform_indices = @transform_4, window_bounds = array<i64: 1, 32>}, {transform_indices = @transform_5, window_bounds = array<i64: 16, 32>}]} {
    %c0 = arith.constant 0 : index
    %c0_0 = arith.constant 0 : index
    %0 = vector.load %arg1[%c0, %c0_0] : memref<16x32xf32, #tpu.memory_space<vmem>>, vector<16x32xf32>
    %c0_1 = arith.constant 0 : index
    %c0_2 = arith.constant 0 : index
    %1 = vector.load %arg2[%c0_1, %c0_2] : memref<32x32xf32, #tpu.memory_space<vmem>>, vector<32x32xf32>
    %cst = arith.constant dense<0.000000e+00> : vector<16x32xf32>
    %2 = tpu.matmul %0, %1, %cst {dimension_numbers = #tpu.dot_dimension_numbers<[1], [0], [0], [1], [0, 0, 1, 1], [], []>} : vector<16x32xf32>, vector<32x32xf32>, vector<16x32xf32> -> vector<16x32xf32>
    %c0_3 = arith.constant 0 : index
    %c0_4 = arith.constant 0 : index
    %3 = vector.load %arg3[%c0_3, %c0_4] : memref<1x32xf32, #tpu.memory_space<vmem>>, vector<1x32xf32>
    %4 = vector.broadcast %3 : vector<1x32xf32> to vector<16x32xf32>
    %5 = arith.addf %2, %4 : vector<16x32xf32>
    %6 = arith.addf %5, %0 : vector<16x32xf32>
    %c0_5 = arith.constant 0 : index
    %c0_6 = arith.constant 0 : index
    %7 = vector.load %arg4[%c0_5, %c0_6] : memref<1x32xf32, #tpu.memory_space<vmem>>, vector<1x32xf32>
    %c0_7 = arith.constant 0 : index
    %c0_8 = arith.constant 0 : index
    %8 = vector.load %arg5[%c0_7, %c0_8] : memref<1x32xf32, #tpu.memory_space<vmem>>, vector<1x32xf32>
    %cst_9 = arith.constant dense<0.000000e+00> : vector<16xf32>
    %9 = vector.multi_reduction <add>, %6, %cst_9 [1] : vector<16x32xf32> to vector<16xf32>
    %10 = vector.shape_cast %9 : vector<16xf32> to vector<16x1xf32>
    %cst_10 = arith.constant 3.200000e+01 : f32
    %11 = vector.broadcast %cst_10 : f32 to vector<16x1xf32>
    %12 = arith.divf %10, %11 : vector<16x1xf32>
    %13 = vector.broadcast %12 : vector<16x1xf32> to vector<16x32xf32>
    %14 = arith.subf %6, %13 : vector<16x32xf32>
    %15 = arith.mulf %14, %14 : vector<16x32xf32>
    %cst_11 = arith.constant dense<0.000000e+00> : vector<16xf32>
    %16 = vector.multi_reduction <add>, %15, %cst_11 [1] : vector<16x32xf32> to vector<16xf32>
    %17 = vector.shape_cast %16 : vector<16xf32> to vector<16x1xf32>
    %cst_12 = arith.constant 3.200000e+01 : f32
    %18 = vector.broadcast %cst_12 : f32 to vector<16x1xf32>
    %19 = arith.divf %17, %18 : vector<16x1xf32>
    %cst_13 = arith.constant 9.99999974E-6 : f32
    %20 = vector.broadcast %cst_13 : f32 to vector<16x1xf32>
    %21 = arith.addf %19, %20 : vector<16x1xf32>
    %22 = math.rsqrt %21 : vector<16x1xf32>
    %23 = vector.broadcast %22 : vector<16x1xf32> to vector<16x32xf32>
    %24 = arith.mulf %14, %23 : vector<16x32xf32>
    %25 = vector.broadcast %7 : vector<1x32xf32> to vector<16x32xf32>
    %26 = arith.mulf %24, %25 : vector<16x32xf32>
    %27 = vector.broadcast %8 : vector<1x32xf32> to vector<16x32xf32>
    %28 = arith.addf %26, %27 : vector<16x32xf32>
    %c0_14 = arith.constant 0 : index
    %c0_15 = arith.constant 0 : index
    %29 = vector.load %arg6[%c0_14, %c0_15] : memref<16x32xf32, #tpu.memory_space<vmem>>, vector<16x32xf32>
    tpu.vector_store %arg6[%c0_14, %c0_15], %28 {strides = array<i32>} : memref<16x32xf32, #tpu.memory_space<vmem>>, vector<16x32xf32>,
    return
  }
  func.func @transform_0(%arg0: i32) -> (i32, i32) {
    %c0_i32 = arith.constant 0 : i32
    %c0_i32_0 = arith.constant 0 : i32
    return %arg0, %c0_i32 : i32, i32
  }
  func.func @transform_1(%arg0: i32) -> (i32, i32) {
    %c0_i32 = arith.constant 0 : i32
    %c0_i32_0 = arith.constant 0 : i32
    %c0_i32_1 = arith.constant 0 : i32
    return %c0_i32, %c0_i32_0 : i32, i32
  }
  func.func @transform_2(%arg0: i32) -> (i32, i32) {
    %c0_i32 = arith.constant 0 : i32
    %c0_i32_0 = arith.constant 0 : i32
    %c0_i32_1 = arith.constant 0 : i32
    return %c0_i32, %c0_i32_0 : i32, i32
  }
  func.func @transform_3(%arg0: i32) -> (i32, i32) {
    %c0_i32 = arith.constant 0 : i32
    %c0_i32_0 = arith.constant 0 : i32
    %c0_i32_1 = arith.constant 0 : i32
    return %c0_i32, %c0_i32_0 : i32, i32
  }
  func.func @transform_4(%arg0: i32) -> (i32, i32) {
    %c0_i32 = arith.constant 0 : i32
    %c0_i32_0 = arith.constant 0 : i32
    %c0_i32_1 = arith.constant 0 : i32
    return %c0_i32, %c0_i32_0 : i32, i32
  }
  func.func @transform_5(%arg0: i32) -> (i32, i32) {
    %c0_i32 = arith.constant 0 : i32
    %c0_i32_0 = arith.constant 0 : i32
    return %arg0, %c0_i32 : i32, i32
  }
}

</mosaic_0001>

<bundles_post_ra>
// kernel: tpu_custom_call.1
= control target key start
LH: loop header
LB: loop body
LE: loop exit
PB: predicated region body
PF: predicated region fallthrough
CT: control target
= control target key end

     0   :  { %10 = vsyncpa [#allocation3], 0  ;;  %s419_s0 = inlined_call_operand.hbm [shape: f32[16,32], index: 0, kind: input, shape index: {}]   ;;  %s420_s1 = inlined_call_operand.hbm [shape: f32[32,32], index: 1, kind: input, shape index: {}]   ;;  %s421_s2 = inlined_call_operand.vmem [shape: f32[1,32], index: 2, kind: input, shape index: {}]   ;;  %s422_s3 = inlined_call_operand.vmem [shape: f32[1,32], index: 3, kind: input, shape index: {}]   ;;  %s423_s4 = inlined_call_operand.vmem [shape: f32[1,32], index: 4, kind: input, shape index: {}]   ;;  %s424_s5 = inlined_call_operand.hbm [shape: f32[16,32], index: 5, kind: output, shape index: {}]  }
   0x1   :  { %11 = vsyncpa [#allocation6], 0 }
   0x2   :  { %12 = vsyncpa [#allocation4], 0  ;;  %s322_s18 = smov [#allocation2]   ;;  %s250_s22 = scalar_lea.hbm %s419_s0, 256 }
   0x3   :  { %s18_s19 = sshll.u32 %s322_s18, 4  ;;  %p251_p0 = scmp.ne.s32.totalorder %s419_s0, %s250_s22  ;;  %s19_s19 = int_to_ptr.vmem [resolvable:$true] %s18_s19 }
   0x4   :  { %p254_p1 = scmp.lt.u32.totalorder %s250_s22, %s419_s0 }
   0x6   :  { %p256_p2 = pnand %p254_p1, %p251_p0 }
   0x8   :  { %259 = shalt.err (!%p256_p2)
}
   0x9   :  { %s260_s27 = scalar_lea.vmem %s19_s19, 256  ;;  %p265_p4 = scmp.lt.s32.totalorder %s19_s19, %s19_s19 }
   0xa   :  { %p261_p3 = scmp.ne.s32.totalorder %s19_s19, %s260_s27  ;;  %p266_p5 = scmp.lt.s32.totalorder %s260_s27, %s260_s27 }
   0xc   :  { %p267_p6 = por %p266_p5, %p265_p4 }
   0xe   :  { %p268_p7 = pnand %p267_p6, %p261_p3 }
  0x10   :  { %271 = shalt.err (!%p268_p7)
}
  0x11   :  { %s323_s28 = smov 128   ;;  %s324_s29 = smov 8  }
  0x12   :  { %24 = dma.hbm_to_vmem [thread:$0]  %s419_s0, 256, %s19_s19, [#allocation3], %s323_s28, %s323_s28, %s324_s29  }
  0x13   :  { %s325_s7 = smov [#allocation5]   ;;  %s272_s11 = scalar_lea.hbm %s420_s1, 512 }
  0x14   :  { %s30_s8 = sshll.u32 %s325_s7, 4  ;;  %p273_p8 = scmp.ne.s32.totalorder %s420_s1, %s272_s11  ;;  %s31_s8 = int_to_ptr.vmem [resolvable:$true] %s30_s8 }
  0x15   :  { %p276_p9 = scmp.lt.u32.totalorder %s272_s11, %s420_s1 }
  0x17   :  { %p278_p10 = pnand %p276_p9, %p273_p8 }
  0x19   :  { %281 = shalt.err (!%p278_p10)
}
  0x1a   :  { %s282_s16 = scalar_lea.vmem %s31_s8, 512  ;;  %p287_p12 = scmp.lt.s32.totalorder %s31_s8, %s31_s8 }
  0x1b   :  { %p283_p11 = scmp.ne.s32.totalorder %s31_s8, %s282_s16  ;;  %p288_p13 = scmp.lt.s32.totalorder %s282_s16, %s282_s16 }
  0x1d   :  { %p289_p0 = por %p288_p13, %p287_p12 }
  0x1f   :  { %p290_p1 = pnand %p289_p0, %p283_p11 }
  0x21   :  { %293 = shalt.err (!%p290_p1)
}
  0x22   :  { %36 = dma.hbm_to_vmem [thread:$0]  %s420_s1, 512, %s31_s8, [#allocation6], %s323_s28, %s323_s28, %s324_s29  }
  0x23   :  { %316 = dma.done.wait [#allocation3], 256  }
  0x24   :  { %317 = vsyncadd [#allocation3], 4294967040 }
  0x25   :  { %318 = dma.done.wait [#allocation6], 512  }
  0x26   :  { %319 = vsyncadd [#allocation6], 4294966784  ;;  %vm62_vm0 = vcmask 261120   ;;  %v51_v0 = vld [vmem:[#allocation5] sm:$0xff]  ;;  %v52_v1 = vld [vmem:[#allocation5 + $0x8] sm:$0xff]  ;;  %s326_s22 = smov [#allocation7]  }
  0x27   :  { %v53_v2 = vld [vmem:[#allocation5 + $0x10] sm:$0xff]  ;;  %v233_v3 = vpack.c.bf16 %v52_v1, %v51_v0  ;;  %v54_v4 = vld [vmem:[#allocation5 + $0x18] sm:$0xff]  ;;  %s198_s23 = sshll.u32 %s326_s22, 4  ;;  %s199_s23 = int_to_ptr.vmem [resolvable:$true] %s198_s23 }
  0x28   :  { %v49_v5 = vld [vmem:[#allocation2] sm:$0xff]  ;;  %v237_v6 = vpack.c.bf16 %v54_v4, %v53_v2  ;;  %v50_v7 = vld [vmem:[#allocation2 + $0x8] sm:$0xff]  ;;  %s294_s24 = scalar_lea.vmem %s199_s23, 256  ;;  %p299_p3 = scmp.lt.s32.totalorder %s199_s23, %s199_s23 }
  0x29   :  { %230 = vmatprep.mubr.msk.f32.mxu0 %vm62_vm0, %v49_v5  ;;  %234 = vmatprep.subr.bf16.mxu0 %v233_v3  ;;  %v211_v8 = vld [vmem:[%s421_s2] ss:$0 sm:$0xff]  ;;  %p295_p2 = scmp.ne.s32.totalorder %s199_s23, %s294_s24  ;;  %p300_p4 = scmp.lt.s32.totalorder %s294_s24, %s294_s24 }
  0x2a   :  { %236 = vmatpush3.bf16.msra.mxu0 %v233_v3  ;;  %v214_v34 = vld [vmem:[%s422_s3] ss:$0 sm:$0xff] }
  0x2b   :  { %238 = vmatprep.subr.bf16.mxu0 %v237_v6  ;;  %v215_v36 = vld [vmem:[%s423_s4] ss:$0 sm:$0xff]  ;;  %p301_p5 = por %p300_p4, %p299_p3 }
  0x2d   :  { %p302_p6 = pnand %p301_p5, %p295_p2 }
  0x2e   :  { %240 = vmatpush3.bf16.msra.mxu0 %v237_v6 }
  0x31   :  { %231 = vmatmul.mubr.msk.f32.vlgmr.msra.gmra.mrb[0].mxu0 %vm62_vm0, %v50_v7 }
 0x104   :  { %v232_v9 = vpop.f32.mrb[0].mxu0 }
 0x105   :  { %v135_v10 = vpop.f32.mrb[1].mxu0  ;;  %v141_v11 = vadd.f32 %v232_v9, %v211_v8 }
 0x106   :  { %v136_v12 = vadd.f32 %v211_v8, %v135_v10 }
 0x107   :  { %v145_v15 = vadd.f32 %v141_v11, %v50_v7 }
 0x108   :  { %v144_v13 = vadd.f32 %v136_v12, %v49_v5 }
 0x109   :  { %v151_v16 = vsel %vm62_vm0, %v145_v15, 0.0 }
 0x10a   :  { %v148_v14 = vsel %vm62_vm0, %v144_v13, 0.0 }
 0x10b   :  { %149 = vadd.xlane.f32.xlu0 %v148_v14 }
 0x10f   :  { %152 = vadd.xlane.f32.xlu0 %v151_v16 }
 0x198   :  { %v150_v17 = vpop.xlane.xlu0 %149 }
 0x199   :  { %v155_v18 = vmul.f32 0.03125, %v150_v17 }
 0x19b   :  { %v157_v19 = vsub.f32 %v144_v13, %v155_v18 }
 0x19c   :  { %v153_v20 = vpop.xlane.xlu0 %152 }
 0x19d   :  { %v156_v21 = vmul.f32 0.03125, %v153_v20  ;;  %v159_v22 = vmul.f32 %v157_v19, %v157_v19 }
 0x19f   :  { %v158_v23 = vsub.f32 %v145_v15, %v156_v21  ;;  %v161_v24 = vsel %vm62_vm0, %v159_v22, 0.0 }
 0x1a0   :  { %162 = vadd.xlane.f32.xlu1 %v161_v24 }
 0x1a1   :  { %v160_v25 = vmul.f32 %v158_v23, %v158_v23 }
 0x1a3   :  { %v164_v26 = vsel %vm62_vm0, %v160_v25, 0.0 }
 0x1a4   :  { %165 = vadd.xlane.f32.xlu1 %v164_v26 }
 0x22d   :  { %v163_v27 = vpop.xlane.xlu1 %162 }
 0x22e   :  { %v167_v28 = vmul.f32 0.03125, %v163_v27 }
 0x230   :  { %v169_v29 = vadd.f32 1e-05, %v167_v28 }
 0x231   :  { %v166_v30 = vpop.xlane.xlu1 %165 }
 0x232   :  { %246 = vrsqrt.f32 %v169_v29  ;;  %v168_v31 = vmul.f32 0.03125, %v166_v30 }
 0x234   :  { %v170_v32 = vadd.f32 1e-05, %v168_v31 }
 0x236   :  { %248 = vrsqrt.f32 %v170_v32 }
 0x23c   :  { %v247_v33 = vpop.eup %246 }
 0x23d   :  { %v173_v35 = vmul.f32 %v247_v33, %v157_v19 }
 0x23f   :  { %v181_v37 = vmul.f32 %v214_v34, %v173_v35 }
 0x240   :  { %v249_v38 = vpop.eup %248 }
 0x241   :  { %v174_v39 = vmul.f32 %v249_v38, %v158_v23  ;;  %v189_v40 = vadd.f32 %v215_v36, %v181_v37 }
 0x243   :  { %v182_v41 = vmul.f32 %v214_v34, %v174_v39  ;;  %191 = vst.msk [vmem:[#allocation7] sm:$0xff] %vm62_vm0, %v189_v40 }
 0x245   :  { %v190_v42 = vadd.f32 %v215_v36, %v182_v41 }
 0x247   :  { %192 = vst.msk [vmem:[#allocation7 + $0x8] sm:$0xff] %vm62_vm0, %v190_v42 }
 0x248   :  { %305 = shalt.err (!%p302_p6)
}
 0x249   :  { %s306_s25 = scalar_lea.hbm %s424_s5, 256 }
 0x24a   :  { %p307_p7 = scmp.ne.s32.totalorder %s424_s5, %s306_s25  ;;  %p310_p8 = scmp.lt.u32.totalorder %s306_s25, %s424_s5 }
 0x24c   :  { %p312_p9 = pnand %p310_p8, %p307_p7 }
 0x24e   :  { %315 = shalt.err (!%p312_p9)
}
 0x24f   :  { %204 = dma.vmem_to_hbm [thread:$0]  %s199_s23, 256, %s424_s5, [#allocation4], %s323_s28, %s323_s28, %s324_s29  }
 0x250   :  { %320 = dma.done.wait [#allocation4], 256  }
 0x251   :  { %321 = vsyncadd [#allocation4], 4294967040 }
 0x252   :  { %208 = vsyncpa [#allocation3], 1 }
 0x253   :  { %209 = vsyncpa [#allocation6], 1 }
 0x254   :  { %210 = vsyncpa [#allocation4], 1 }

</bundles_post_ra>
